<compile_context>
chip_gen: v5e
topology: v5e:2x2
jax: 0.10.0
libtpu: 0.0.40
codegen_flags: <defaults>
</compile_context>

<pallas_src>
import math

import jax
import jax.numpy as jnp
from jax import lax
from jax.experimental import pallas as pl
from jax.experimental.pallas import tpu as pltpu


def _round_up(x, m):
    return ((x + m - 1) // m) * m


def _vmem_capacity_bytes():
    try:
        return int(pltpu.get_tpu_info().vmem_capacity_bytes)
    except Exception:
        return 64 * 1024 * 1024  # conservative fallback (v7x per-TC VMEM)


def _make_mlp_kernel(activation, approximate_gelu):
    def kernel(x_ref, w1_ref, b1_ref, w2_ref, b2_ref, o_ref):
        # (tm, H) @ (H, H) on the MXU, f32 accumulation.
        h = jnp.dot(x_ref[...], w1_ref[...], preferred_element_type=jnp.float32)
        h = h + b1_ref[...]                                   # (1, H) broadcast, f32
        if activation == "gelu":
            if approximate_gelu:
                # tanh approximation -> EUP slot; numerics differ slightly from torch default
                h = jax.nn.gelu(h, approximate=True)
            else:
                # exact erf GELU, matches torch.nn.GELU() default
                h = 0.5 * h * (1.0 + lax.erf(h * jnp.float32(1.0 / math.sqrt(2.0))))
        elif activation == "tanh":
            h = jnp.tanh(h)
        elif activation == "relu":
            h = jnp.maximum(h, jnp.float32(0.0))
        else:
            raise ValueError(f"unsupported activation: {activation}")
        o = jnp.dot(h.astype(w2_ref.dtype), w2_ref[...],
                    preferred_element_type=jnp.float32)
        o = o + b2_ref[...]                                   # (1, L_pad) broadcast, f32
        o_ref[...] = o.astype(o_ref.dtype)
    return kernel


def _pick_tm(m, hidden, l_pad, compute_bytes, out_bytes, vmem_bytes):
    """Largest row tile (multiple of 32, <= 1024) whose working set fits ~60% of VMEM."""
    budget = int(0.6 * vmem_bytes)
    # resident weights / biases (double-buffered by the default pipeline)
    weights = 2 * (hidden * hidden + hidden * l_pad) * compute_bytes + 2 * (hidden + l_pad) * 4
    tm = 1024
    while tm > 32:
        per_tile = (2 * tm * hidden * compute_bytes      # x tile, double buffered
                    + 2 * tm * l_pad * out_bytes          # out tile, double buffered
                    + tm * (hidden + l_pad) * 4)          # f32 intermediates
        if weights + per_tile <= budget:
            break
        tm //= 2
    # no point tiling past the (padded) row count
    tm = min(tm, _round_up(max(m, 1), 32))
    # keep >= 2 grid steps when there is enough work (megacore sharding on v7x)
    if m > 256:
        tm = min(tm, _round_up(-(-m // 2), 32))
    return max(tm, 32)


def mlp_classifier_forward(x, w1, b1, w2, b2, *, activation="gelu",
                           approximate_gelu=False,
                           compute_dtype=jnp.bfloat16, tm=None):
    """Fused  activation(x @ W1 + b1) @ W2 + b2.

    x:  (..., hidden)        w1: (hidden, hidden)  (stored (in, out))
    b1: (hidden,)            w2: (hidden, num_labels)
    b2: (num_labels,)
    """
    hidden = w1.shape[0]
    num_labels = w2.shape[1]
    lead_shape = x.shape[:-1]
    out_dtype = x.dtype

    xm = x.reshape(-1, hidden)
    m = xm.shape[0]

    c_bytes = jnp.dtype(compute_dtype).itemsize
    o_bytes = jnp.dtype(out_dtype).itemsize
    vmem_cap = _vmem_capacity_bytes()

    # lane-dense output: pad the label dim up to a multiple of 128
    l_pad = _round_up(num_labels, 128)

    if tm is None:
        tm = _pick_tm(m, hidden, l_pad, c_bytes, o_bytes, vmem_cap)
    m_pad = _round_up(max(m, 1), tm)

    # pad rows (zeros) so the grid divides exactly; padded rows are sliced off below
    if m_pad != m:
        xm = jnp.pad(xm, ((0, m_pad - m), (0, 0)))

    # MXU inputs in compute_dtype (bf16 by default); biases stay f32
    xm_c = xm.astype(compute_dtype)
    w1_c = w1.astype(compute_dtype)
    w2_c = jnp.zeros((hidden, l_pad), compute_dtype).at[:, :num_labels].set(
        w2.astype(compute_dtype))
    b1_2d = b1.astype(jnp.float32).reshape(1, hidden)
    b2_2d = jnp.zeros((1, l_pad), jnp.float32).at[0, :num_labels].set(
        b2.astype(jnp.float32))

    grid = (m_pad // tm,)

    flops = 2 * m_pad * hidden * hidden + 2 * m_pad * hidden * l_pad
    transcendentals = m_pad * hidden if activation in ("gelu", "tanh") else 0
    bytes_accessed = int(xm_c.size) * c_bytes + int(w1_c.size) * c_bytes \
        + int(w2_c.size) * c_bytes + (hidden + l_pad) * 4 + m_pad * l_pad * o_bytes

    needed_vmem = (2 * (hidden * hidden + hidden * l_pad) * c_bytes
                   + 2 * tm * hidden * c_bytes + 2 * tm * l_pad * o_bytes
                   + 2 * tm * (hidden + l_pad) * 4)
    vmem_limit = int(min(max(needed_vmem, 32 * 2**20), 0.7 * vmem_cap))

    out = pl.pallas_call(
        _make_mlp_kernel(activation, approximate_gelu),
        out_shape=jax.ShapeDtypeStruct((m_pad, l_pad), out_dtype),
        grid_spec=pltpu.PrefetchScalarGridSpec(
            num_scalar_prefetch=0,
            grid=grid,
            in_specs=[
                pl.BlockSpec((tm, hidden), lambda i: (i, 0)),       # x row tile (streams)
                pl.BlockSpec((hidden, hidden), lambda i: (0, 0)),   # W1 (resident)
                pl.BlockSpec((1, hidden), lambda i: (0, 0)),        # b1
                pl.BlockSpec((hidden, l_pad), lambda i: (0, 0)),    # W2 (resident, lane-padded)
                pl.BlockSpec((1, l_pad), lambda i: (0, 0)),         # b2
            ],
            out_specs=pl.BlockSpec((tm, l_pad), lambda i: (i, 0)),  # lane-dense store
        ),
        compiler_params=pltpu.CompilerParams(
            dimension_semantics=("parallel",),
            vmem_limit_bytes=vmem_limit,
        ),
        cost_estimate=pl.CostEstimate(
            flops=flops,
            transcendentals=transcendentals,
            bytes_accessed=bytes_accessed,
        ),
    )(xm_c, w1_c, b1_2d, w2_c, b2_2d)

    out = out[:m, :num_labels]
    return out.reshape(*lead_shape, num_labels)


def _init_linear(key, fan_in, fan_out):
    """Deterministic init mimicking torch.nn.Linear defaults (kaiming uniform)."""
    kw, kb = jax.random.split(key)
    bound_w = math.sqrt(1.0 / fan_in) * math.sqrt(3.0)  # kaiming_uniform(a=sqrt(5))
    bound_b = 1.0 / math.sqrt(fan_in)
    # stored as (in, out): already transposed relative to torch's (out, in)
    w = jax.random.uniform(kw, (fan_in, fan_out), jnp.float32, -bound_w, bound_w)
    b = jax.random.uniform(kb, (fan_out,), jnp.float32, -bound_b, bound_b)
    return w, b


if __name__ == "__main__":
    hidden_size = 32
    num_labels = 4
    batch, seq = 2, 8

    key = jax.random.PRNGKey(0)
    kx, k1, k2 = jax.random.split(key, 3)

    x = jax.random.normal(kx, (batch, seq, hidden_size), jnp.float32)
    w1, b1 = _init_linear(k1, hidden_size, hidden_size)   # dense_layer
    w2, b2 = _init_linear(k2, hidden_size, num_labels)    # dense_to_labels_layer

    # pure-JAX reference (exact erf GELU == torch.nn.GELU default)
    h_ref = x @ w1 + b1
    h_ref = 0.5 * h_ref * (1.0 + lax.erf(h_ref / jnp.float32(math.sqrt(2.0))))
    ref = h_ref @ w2 + b2

    # 1) f32 MXU path: tight check vs reference
    out_f32 = mlp_classifier_forward(x, w1, b1, w2, b2, compute_dtype=jnp.float32)
    out_f32 = jax.block_until_ready(out_f32)
    assert out_f32.shape == (batch, seq, num_labels)
    assert jnp.allclose(out_f32, ref, atol=1e-5, rtol=1e-5)

    # 2) default bf16-MXU / f32-accumulate path: looser tolerance
    out_bf16 = mlp_classifier_forward(x, w1, b1, w2, b2)
    out_bf16 = jax.block_until_ready(out_bf16)
    assert out_bf16.shape == (batch, seq, num_labels)
    assert jnp.allclose(out_bf16, ref, atol=5e-2, rtol=5e-2)

    print("KERNEL_OK")
</pallas_src>

<mosaic_0001>
module attributes {stable_mosaic.version = 11 : i64} {
  func.func @kernel(%arg0: i32, %arg1: memref<32x32xf32, #tpu.memory_space<vmem>>, %arg2: memref<32x32xf32, #tpu.memory_space<vmem>>, %arg3: memref<1x32xf32, #tpu.memory_space<vmem>>, %arg4: memref<32x128xf32, #tpu.memory_space<vmem>>, %arg5: memref<1x128xf32, #tpu.memory_space<vmem>>, %arg6: memref<32x128xf32, #tpu.memory_space<vmem>>) attributes {dimension_semantics = [#tpu.dimension_semantics<parallel>], iteration_bounds = array<i64: 1>, scalar_prefetch = 0 : i64, scratch_operands = 0 : i64, tpu.core_type = #tpu.core_type<tc>, window_params = [{transform_indices = @transform_0, window_bounds = array<i64: 32, 32>}, {pipeline_mode = #tpu.pipeline_mode<synchronous>, transform_indices = @transform_1, window_bounds = array<i64: 32, 32>}, {pipeline_mode = #tpu.pipeline_mode<synchronous>, transform_indices = @transform_2, window_bounds = array<i64: 1, 32>}, {pipeline_mode = #tpu.pipeline_mode<synchronous>, transform_indices = @transform_3, window_bounds = array<i64: 32, 128>}, {pipeline_mode = #tpu.pipeline_mode<synchronous>, transform_indices = @transform_4, window_bounds = array<i64: 1, 128>}, {transform_indices = @transform_5, window_bounds = array<i64: 32, 128>}]} {
    %c0 = arith.constant 0 : index
    %c0_0 = arith.constant 0 : index
    %0 = vector.load %arg1[%c0, %c0_0] : memref<32x32xf32, #tpu.memory_space<vmem>>, vector<32x32xf32>
    %c0_1 = arith.constant 0 : index
    %c0_2 = arith.constant 0 : index
    %1 = vector.load %arg2[%c0_1, %c0_2] : memref<32x32xf32, #tpu.memory_space<vmem>>, vector<32x32xf32>
    %cst = arith.constant dense<0.000000e+00> : vector<32x32xf32>
    %2 = tpu.matmul %0, %1, %cst {dimension_numbers = #tpu.dot_dimension_numbers<[1], [0], [0], [1], [0, 0, 1, 1], [], []>} : vector<32x32xf32>, vector<32x32xf32>, vector<32x32xf32> -> vector<32x32xf32>
    %c0_3 = arith.constant 0 : index
    %c0_4 = arith.constant 0 : index
    %3 = vector.load %arg3[%c0_3, %c0_4] : memref<1x32xf32, #tpu.memory_space<vmem>>, vector<1x32xf32>
    %4 = vector.broadcast %3 : vector<1x32xf32> to vector<32x32xf32>
    %5 = arith.addf %2, %4 : vector<32x32xf32>
    %cst_5 = arith.constant 5.000000e-01 : f32
    %6 = vector.broadcast %cst_5 : f32 to vector<32x32xf32>
    %7 = arith.mulf %6, %5 : vector<32x32xf32>
    %cst_6 = arith.constant 0.707106769 : f32
    %8 = vector.broadcast %cst_6 : f32 to vector<32x32xf32>
    %9 = arith.mulf %5, %8 : vector<32x32xf32>
    %10 = math.erf %9 : vector<32x32xf32>
    %cst_7 = arith.constant 1.000000e+00 : f32
    %11 = vector.broadcast %cst_7 : f32 to vector<32x32xf32>
    %12 = arith.addf %11, %10 : vector<32x32xf32>
    %13 = arith.mulf %7, %12 : vector<32x32xf32>
    %c0_8 = arith.constant 0 : index
    %c0_9 = arith.constant 0 : index
    %14 = vector.load %arg4[%c0_8, %c0_9] : memref<32x128xf32, #tpu.memory_space<vmem>>, vector<32x128xf32>
    %cst_10 = arith.constant dense<0.000000e+00> : vector<32x128xf32>
    %15 = tpu.matmul %13, %14, %cst_10 {dimension_numbers = #tpu.dot_dimension_numbers<[1], [0], [0], [1], [0, 0, 1, 1], [], []>} : vector<32x32xf32>, vector<32x128xf32>, vector<32x128xf32> -> vector<32x128xf32>
    %c0_11 = arith.constant 0 : index
    %c0_12 = arith.constant 0 : index
    %16 = vector.load %arg5[%c0_11, %c0_12] : memref<1x128xf32, #tpu.memory_space<vmem>>, vector<1x128xf32>
    %17 = vector.broadcast %16 : vector<1x128xf32> to vector<32x128xf32>
    %18 = arith.addf %15, %17 : vector<32x128xf32>
    %c0_13 = arith.constant 0 : index
    %c0_14 = arith.constant 0 : index
    %19 = vector.load %arg6[%c0_13, %c0_14] : memref<32x128xf32, #tpu.memory_space<vmem>>, vector<32x128xf32>
    tpu.vector_store %arg6[%c0_13, %c0_14], %18 {strides = array<i32>} : memref<32x128xf32, #tpu.memory_space<vmem>>, vector<32x128xf32>,
    return
  }
  func.func @transform_0(%arg0: i32) -> (i32, i32) {
    %c0_i32 = arith.constant 0 : i32
    %c0_i32_0 = arith.constant 0 : i32
    return %arg0, %c0_i32 : i32, i32
  }
  func.func @transform_1(%arg0: i32) -> (i32, i32) {
    %c0_i32 = arith.constant 0 : i32
    %c0_i32_0 = arith.constant 0 : i32
    %c0_i32_1 = arith.constant 0 : i32
    return %c0_i32, %c0_i32_0 : i32, i32
  }
  func.func @transform_2(%arg0: i32) -> (i32, i32) {
    %c0_i32 = arith.constant 0 : i32
    %c0_i32_0 = arith.constant 0 : i32
    %c0_i32_1 = arith.constant 0 : i32
    return %c0_i32, %c0_i32_0 : i32, i32
  }
  func.func @transform_3(%arg0: i32) -> (i32, i32) {
    %c0_i32 = arith.constant 0 : i32
    %c0_i32_0 = arith.constant 0 : i32
    %c0_i32_1 = arith.constant 0 : i32
    return %c0_i32, %c0_i32_0 : i32, i32
  }
  func.func @transform_4(%arg0: i32) -> (i32, i32) {
    %c0_i32 = arith.constant 0 : i32
    %c0_i32_0 = arith.constant 0 : i32
    %c0_i32_1 = arith.constant 0 : i32
    return %c0_i32, %c0_i32_0 : i32, i32
  }
  func.func @transform_5(%arg0: i32) -> (i32, i32) {
    %c0_i32 = arith.constant 0 : i32
    %c0_i32_0 = arith.constant 0 : i32
    return %arg0, %c0_i32 : i32, i32
  }
}

</mosaic_0001>

<bundles_post_ra>
// kernel: tpu_custom_call.1
= control target key start
LH: loop header
LB: loop body
LE: loop exit
PB: predicated region body
PF: predicated region fallthrough
CT: control target
= control target key end

     0   :  { %10 = vsyncpa [#allocation3], 0  ;;  %s674_s0 = inlined_call_operand.hbm [shape: f32[32,32], index: 0, kind: input, shape index: {}]   ;;  %s675_s1 = inlined_call_operand.hbm [shape: f32[32,32], index: 1, kind: input, shape index: {}]   ;;  %s676_s2 = inlined_call_operand.vmem [shape: f32[1,32], index: 2, kind: input, shape index: {}]   ;;  %s677_s3 = inlined_call_operand.hbm [shape: f32[32,128], index: 3, kind: input, shape index: {}]   ;;  %s678_s4 = inlined_call_operand.vmem [shape: f32[1,128], index: 4, kind: input, shape index: {}]   ;;  %s679_s5 = inlined_call_operand.hbm [shape: f32[32,128], index: 5, kind: output, shape index: {}]  }
   0x1   :  { %11 = vsyncpa [#allocation6], 0 }
   0x2   :  { %12 = vsyncpa [#allocation4], 0  ;;  %s30_s20 = sshll.u32 %s675_s1, 4  ;;  %s509_s21 = smov [#allocation5]   ;;  %s31_s20 = int_to_ptr.hbm [resolvable:$true] %s30_s20 }
   0x3   :  { %s32_s22 = sshll.u32 %s509_s21, 4  ;;  %s17_s25 = sshll.u32 %s674_s0, 4  ;;  %s33_s22 = int_to_ptr.vmem [resolvable:$true] %s32_s22  ;;  %s18_s25 = int_to_ptr.hbm [resolvable:$true] %s17_s25 }
   0x4   :  { %s510_s26 = smov 128   ;;  %s511_s27 = smov 8  }
   0x5   :  { %38 = dma.hbm_to_vmem [thread:$0]  %s31_s20, 512, %s33_s22, [#allocation6], %s510_s26, %s510_s26, %s511_s27  }
   0x6   :  { %s512_s28 = smov [#allocation2]   ;;  %s45_s1 = sshll.u32 %s677_s3, 4  ;;  %s46_s1 = int_to_ptr.hbm [resolvable:$true] %s45_s1 }
   0x7   :  { %s19_s29 = sshll.u32 %s512_s28, 4  ;;  %s513_s0 = smov [#allocation7]   ;;  %s20_s29 = int_to_ptr.vmem [resolvable:$true] %s19_s29 }
   0x8   :  { %25 = dma.hbm_to_vmem [thread:$0]  %s18_s25, 512, %s20_s29, [#allocation3], %s510_s26, %s510_s26, %s511_s27  }
   0x9   :  { %s47_s7 = sshll.u32 %s513_s0, 4  ;;  %s48_s7 = int_to_ptr.vmem [resolvable:$true] %s47_s7 }
   0xa   :  { %53 = dma.hbm_to_vmem [thread:$0]  %s46_s1, 512, %s48_s7, [#allocation6], %s510_s26, %s510_s26, %s511_s27  }
   0xb   :  { %503 = dma.done.wait [#allocation3], 512  }
   0xc   :  { %504 = vsyncadd [#allocation3], 4294966784 }
   0xd   :  { %505 = dma.done.wait [#allocation6], 1024  }
   0xe   :  { %506 = vsyncadd [#allocation6], 4294966272  ;;  %v75_v0 = vld [vmem:[#allocation5 + $0x18] sm:$0xff]  ;;  %v74_v1 = vld [vmem:[#allocation5 + $0x10] sm:$0xff]  ;;  %vm80_vm0 = vcmask 261120   ;;  %s514_s10 = smov [#allocation8]  }
   0xf   :  { %105 = vmatpush.msra.mxu0 %v75_v0  ;;  %383 = vmatpush.msra.mxu2 %v75_v0  ;;  %v73_v2 = vld [vmem:[#allocation5 + $0x8] sm:$0xff]  ;;  %v72_v3 = vld [vmem:[#allocation5] sm:$0xff]  ;;  %v70_v5 = vld [vmem:[#allocation2 + $0x10] sm:$0xff]  ;;  %s355_s11 = sshll.u32 %s514_s10, 4  ;;  %s357_s14 = sshll.u32 %s679_s5, 4  ;;  %s356_s11 = int_to_ptr.vmem [resolvable:$true] %s355_s11  ;;  %s358_s14 = int_to_ptr.hbm [resolvable:$true] %s357_s14 }
  0x10   :  { %v68_v4 = vld [vmem:[#allocation2] sm:$0xff]  ;;  %v69_v6 = vld [vmem:[#allocation2 + $0x8] sm:$0xff]  ;;  %v71_v7 = vld [vmem:[#allocation2 + $0x18] sm:$0xff] }
  0x11   :  { %106 = vmatpush.msra.mxu0 %v74_v1  ;;  %384 = vmatpush.msra.mxu2 %v74_v1  ;;  %v397_v8 = vld [vmem:[%s676_s2] ss:$0 sm:$0xff]  ;;  %v301_v51 = vld [vmem:[#allocation7 + $0x18] sm:$0xff]  ;;  %v300_v61 = vld [vmem:[#allocation7 + $0x10] sm:$0xff] }
  0x12   :  { %330 = vmatpush.msra.mxu1 %v301_v51  ;;  %387 = vmatpush.msra.mxu3 %v301_v51  ;;  %v299_v1 = vld [vmem:[#allocation7 + $0x8] sm:$0xff] }
  0x13   :  { %107 = vmatpush.msra.mxu0 %v73_v2  ;;  %385 = vmatpush.msra.mxu2 %v73_v2 }
  0x14   :  { %331 = vmatpush.msra.mxu1 %v300_v61  ;;  %388 = vmatpush.msra.mxu3 %v300_v61 }
  0x15   :  { %108 = vmatpush.msra.mxu0 %v72_v3  ;;  %386 = vmatpush.msra.mxu2 %v72_v3 }
  0x16   :  { %371 = vmatmul.msk.f32.vlgmr.msra.gmra.mxu0 %vm80_vm0, %v68_v4  ;;  %373 = vmatmul.msk.f32.vlgmr.msra.gmra.mxu2 %vm80_vm0, %v70_v5 }
  0x17   :  { %332 = vmatpush.msra.mxu1 %v299_v1  ;;  %389 = vmatpush.msra.mxu3 %v299_v1 }
  0x1e   :  { %372 = vmatmul.msk.f32.gmra.mxu0 %vm80_vm0, %v69_v6  ;;  %374 = vmatmul.msk.f32.gmra.mxu2 %vm80_vm0, %v71_v7 }
  0x93   :  { %v110_v9 = vpop.f32.mrf.mxu0 }
  0x94   :  { %v570_v10 = vadd.f32 %v397_v8, %v110_v9  ;;  %v298_v9 = vld [vmem:[#allocation7] sm:$0xff] }
  0x95   :  { %333 = vmatpush.msra.mxu1 %v298_v9  ;;  %390 = vmatpush.msra.mxu3 %v298_v9 }
  0x96   :  { %v573_v11 = vmul.f32 0.70710677, %v570_v10 }
  0x98   :  { %v130_v12 = vmul.f32 %v573_v11, %v573_v11 }
  0x99   :  { %v116_v13 = vpop.f32.mrf.mxu2 }
  0x9a   :  { %v577_v14 = vmin.f32 %v130_v12, 16.0  ;;  %v579_v15 = vadd.f32 %v397_v8, %v116_v13 }
  0x9b   :  { %v113_v16 = vpop.f32.mrf.mxu0 }
  0x9c   :  { %v132_v17 = vmul.f32 2.1237322e-06, %v577_v14  ;;  %v143_v18 = vmul.f32 3.8918573e-05, %v577_v14  ;;  %v583_v19 = vadd.f32 %v397_v8, %v113_v16  ;;  %v586_v20 = vmul.f32 0.70710677, %v579_v15 }
  0x9e   :  { %v133_v21 = vadd.f32 0.00028619796, %v132_v17  ;;  %v144_v22 = vadd.f32 0.001143296, %v143_v18  ;;  %v210_v23 = vmul.f32 %v586_v20, %v586_v20  ;;  %v591_v24 = vmul.f32 0.70710677, %v583_v19 }
  0xa0   :  { %v134_v25 = vmul.f32 %v133_v21, %v577_v14  ;;  %v145_v26 = vmul.f32 %v144_v22, %v577_v14  ;;  %v595_v27 = vmin.f32 %v210_v23, 16.0  ;;  %v170_v28 = vmul.f32 %v591_v24, %v591_v24 }
  0xa1   :  { %v119_v29 = vpop.f32.mrf.mxu2 }
  0xa2   :  { %v135_v30 = vadd.f32 0.0036580483, %v134_v25  ;;  %v146_v31 = vadd.f32 0.014752088, %v145_v26  ;;  %v599_v32 = vadd.f32 %v397_v8, %v119_v29  ;;  %v212_v33 = vmul.f32 2.1237322e-06, %v595_v27 }
  0xa3   :  { %v223_v34 = vmul.f32 3.8918573e-05, %v595_v27  ;;  %v603_v35 = vmin.f32 %v170_v28, 16.0 }
  0xa4   :  { %v147_v36 = vmul.f32 %v146_v31, %v577_v14  ;;  %v607_v37 = vmul.f32 0.70710677, %v599_v32  ;;  %v213_v38 = vadd.f32 0.00028619796, %v212_v33  ;;  %v136_v41 = vmul.f32 %v135_v30, %v577_v14 }
  0xa5   :  { %v224_v39 = vadd.f32 0.001143296, %v223_v34  ;;  %v172_v40 = vmul.f32 2.1237322e-06, %v603_v35  ;;  %v183_v43 = vmul.f32 3.8918573e-05, %v603_v35 }
  0xa6   :  { %v148_v42 = vadd.f32 0.112945676, %v147_v36  ;;  %v250_v44 = vmul.f32 %v607_v37, %v607_v37  ;;  %v214_v45 = vmul.f32 %v213_v38, %v595_v27  ;;  %v137_v55 = vadd.f32 0.05243302, %v136_v41 }
  0xa7   :  { %v225_v46 = vmul.f32 %v224_v39, %v595_v27  ;;  %v173_v47 = vadd.f32 0.00028619796, %v172_v40  ;;  %v184_v49 = vadd.f32 0.001143296, %v183_v43 }
  0xa8   :  { %v149_v48 = vmul.f32 %v148_v42, %v577_v14  ;;  %v617_v50 = vmin.f32 %v250_v44, 16.0  ;;  %v215_v52 = vadd.f32 0.0036580483, %v214_v45  ;;  %v138_v5 = vmul.f32 %v137_v55, %v577_v14 }
  0xa9   :  { %v226_v53 = vadd.f32 0.014752088, %v225_v46  ;;  %v174_v54 = vmul.f32 %v173_v47, %v603_v35  ;;  %v185_v57 = vmul.f32 %v184_v49, %v603_v35 }
  0xaa   :  { %v150_v56 = vadd.f32 0.4994258, %v149_v48  ;;  %v252_v58 = vmul.f32 2.1237322e-06, %v617_v50  ;;  %v263_v60 = vmul.f32 3.8918573e-05, %v617_v50  ;;  %v216_v63 = vmul.f32 %v215_v52, %v595_v27 }
  0xab   :  { %v227_v59 = vmul.f32 %v226_v53, %v595_v27  ;;  %v186_v0 = vadd.f32 0.014752088, %v185_v57  ;;  %v175_v3 = vadd.f32 0.0036580483, %v174_v54  ;;  %v139_v21 = vadd.f32 0.18741608, %v138_v5 }
  0xac   :  { %v151_v62 = vmul.f32 %v150_v56, %v577_v14  ;;  %v264_v4 = vadd.f32 0.001143296, %v263_v60  ;;  %v253_v8 = vadd.f32 0.00028619796, %v252_v58  ;;  %v217_v13 = vadd.f32 0.05243302, %v216_v63 }
  0xad   :  { %v228_v2 = vadd.f32 0.112945676, %v227_v59  ;;  %v187_v7 = vmul.f32 %v186_v0, %v603_v35  ;;  %v176_v18 = vmul.f32 %v175_v3, %v603_v35  ;;  %v140_v34 = vmul.f32 %v139_v21, %v577_v14 }
  0xae   :  { %v152_v6 = vadd.f32 1.0, %v151_v62  ;;  %v265_v16 = vmul.f32 %v264_v4, %v617_v50  ;;  %v254_v23 = vmul.f32 %v253_v8, %v617_v50  ;;  %v218_v26 = vmul.f32 %v217_v13, %v595_v27 }
  0xaf   :  { %v229_v12 = vmul.f32 %v228_v2, %v595_v27  ;;  %v188_v22 = vadd.f32 0.112945676, %v187_v7  ;;  %v177_v31 = vadd.f32 0.05243302, %v176_v18  ;;  %v141_v46 = vadd.f32 1.1283791, %v140_v34 }
  0xb0   :  { %399 = vrcp.f32 %v152_v6  ;;  %v266_v29 = vadd.f32 0.014752088, %v265_v16  ;;  %v255_v38 = vadd.f32 0.0036580483, %v254_v23  ;;  %v219_v41 = vadd.f32 0.18741608, %v218_v26 }
  0xb1   :  { %v230_v17 = vadd.f32 0.4994258, %v229_v12  ;;  %v189_v28 = vmul.f32 %v188_v22, %v603_v35  ;;  %v178_v43 = vmul.f32 %v177_v31, %v603_v35  ;;  %v162_v47 = vand.u32 2147483647, %v152_v6 }
  0xb2   :  { %v267_v39 = vmul.f32 %v266_v29, %v617_v50  ;;  %v164_v48 = vand.u32 2147483648, %v152_v6  ;;  %v256_v49 = vmul.f32 %v255_v38, %v617_v50  ;;  %v220_v53 = vmul.f32 %v219_v41, %v595_v27 }
  0xb3   :  { %v231_v25 = vmul.f32 %v230_v17, %v595_v27  ;;  %v190_v36 = vadd.f32 0.4994258, %v189_v28  ;;  %vm158_vm2 = vweird.f32 %v152_v6  ;;  %v179_v56 = vadd.f32 0.18741608, %v178_v43 }
  0xb4   :  { %v268_v45 = vadd.f32 0.112945676, %v267_v39  ;;  %v142_v57 = vmul.f32 %v141_v46, %v573_v11  ;;  %v165_v58 = vor.u32 1.1754944e-38, %v164_v48  ;;  %vm163_vm4 = vcmp.eq.f32.partialorder %v162_v47, 8.507059e+37 }
  0xb5   :  { %v232_v30 = vadd.f32 1.0, %v231_v25  ;;  %v191_v44 = vmul.f32 %v190_v36, %v603_v35  ;;  %v257_v61 = vadd.f32 0.05243302, %v256_v49  ;;  %v221_v0 = vadd.f32 1.1283791, %v220_v53 }
  0xb6   :  { %v400_v33 = vpop.eup %399  ;;  %v269_v52 = vmul.f32 %v268_v45, %v617_v50  ;;  %v180_v3 = vmul.f32 %v179_v56, %v603_v35  ;;  %v122_v12 = vmul.f32 0.5, %v570_v10  ;;  %v124_v36 = vmul.f32 0.5, %v579_v15 }
  0xb7   :  { %v154_v40 = vmul.f32 %v400_v33, %v152_v6  ;;  %401 = vrcp.f32 %v232_v30  ;;  %vm159_vm1 = vweird.f32 %v400_v33  ;;  %v640_v14 = vadd.f32 1.0, %v191_v44 }
  0xb8   :  { %vm160_vm3 = vmor %vm158_vm2, %vm159_vm1  ;;  %v270_v62 = vadd.f32 0.4994258, %v269_v52  ;;  %v244_v27 = vand.u32 2147483648, %v232_v30  ;;  %v242_v6 = vand.u32 2147483647, %v232_v30  ;;  %v258_v7 = vmul.f32 %v257_v61, %v617_v50 }
  0xb9   :  { %v155_v42 = vsub.f32 1.0, %v154_v40  ;;  %403 = vrcp.f32 %v640_v14  ;;  %vm238_vm6 = vweird.f32 %v232_v30  ;;  %v222_v17 = vmul.f32 %v221_v0, %v586_v20 }
  0xba   :  { %v271_v4 = vmul.f32 %v270_v62, %v617_v50  ;;  %v245_v35 = vor.u32 1.1754944e-38, %v244_v27  ;;  %v181_v18 = vadd.f32 1.1283791, %v180_v3  ;;  %vm243_vm8 = vcmp.eq.f32.partialorder %v242_v6, 8.507059e+37 }
  0xbb   :  { %v156_v51 = vmul.f32 %v400_v33, %v155_v42  ;;  %v202_v26 = vand.u32 2147483647, %v640_v14  ;;  %v204_v28 = vand.u32 2147483648, %v640_v14  ;;  %v259_v10 = vadd.f32 0.18741608, %v258_v7 }
  0xbc   :  { %v272_v8 = vadd.f32 1.0, %v271_v4  ;;  %vm198_vm10 = vweird.f32 %v640_v14  ;;  %v182_v38 = vmul.f32 %v181_v18, %v591_v24  ;;  %v123_v24 = vmul.f32 0.5, %v583_v19  ;;  %v398_v19 = vld [vmem:[%s678_s4] ss:$0 sm:$0xff] }
  0xbd   :  { %v402_v54 = vpop.eup %401  ;;  %v157_v55 = vadd.f32 %v400_v33, %v156_v51  ;;  %v205_v39 = vor.u32 1.1754944e-38, %v204_v28  ;;  %v260_v40 = vmul.f32 %v259_v10, %v617_v50  ;;  %vm203_vm12 = vcmp.eq.f32.partialorder %v202_v26, 8.507059e+37 }
  0xbe   :  { %v234_v59 = vmul.f32 %v402_v54, %v232_v30  ;;  %vm239_vm5 = vweird.f32 %v402_v54  ;;  %405 = vrcp.f32 %v272_v8  ;;  %v284_v49 = vand.u32 2147483648, %v272_v8 }
  0xbf   :  { %v161_v60 = vsel %vm160_vm3, %v400_v33, %v157_v55  ;;  %v404_v11 = vpop.eup %403  ;;  %vm240_vm7 = vmor %vm238_vm6, %vm239_vm5  ;;  %v261_v48 = vadd.f32 1.1283791, %v260_v40  ;;  %vm278_vm14 = vweird.f32 %v272_v8 }
  0xc0   :  { %v166_v63 = vsel %vm163_vm4, %v165_v58, %v161_v60  ;;  %v235_v1 = vsub.f32 1.0, %v234_v59  ;;  %v194_v16 = vmul.f32 %v404_v11, %v640_v14  ;;  %vm199_vm9 = vweird.f32 %v404_v11 }
  0xc1   :  { %v167_v2 = vmul.f32 %v166_v63, %v142_v57  ;;  %vm200_vm11 = vmor %vm198_vm10, %vm199_vm9  ;;  %v282_v14 = vand.u32 2147483647, %v272_v8  ;;  %v285_v53 = vor.u32 1.1754944e-38, %v284_v49  ;;  %v125_v60 = vmul.f32 0.5, %v599_v32 }
  0xc2   :  { %v236_v5 = vmul.f32 %v402_v54, %v235_v1  ;;  %v195_v22 = vsub.f32 1.0, %v194_v16 }
  0xc3   :  { %v375_v9 = vclamps-f32 %v167_v2, 1.0  ;;  %vm283_vm1 = vcmp.eq.f32.partialorder %v282_v14, 8.507059e+37 }
  0xc4   :  { %v237_v13 = vadd.f32 %v402_v54, %v236_v5  ;;  %v196_v30 = vmul.f32 %v404_v11, %v195_v22  ;;  %v406_v34 = vpop.eup %405 }
  0xc5   :  { %v290_v23 = vadd.f32 1.0, %v375_v9  ;;  %v274_v42 = vmul.f32 %v406_v34, %v272_v8  ;;  %vm279_vm13 = vweird.f32 %v406_v34 }
  0xc6   :  { %v241_v21 = vsel %vm240_vm7, %v402_v54, %v237_v13  ;;  %v197_v33 = vadd.f32 %v404_v11, %v196_v30  ;;  %vm280_vm15 = vmor %vm278_vm14, %vm279_vm13  ;;  %v262_v54 = vmul.f32 %v261_v48, %v607_v37 }
  0xc7   :  { %v246_v25 = vsel %vm243_vm8, %v245_v35, %v241_v21  ;;  %v294_v31 = vmul.f32 %v290_v23, %v122_v12  ;;  %v275_v46 = vsub.f32 1.0, %v274_v42 }
  0xc8   :  { %v247_v29 = vmul.f32 %v246_v25, %v222_v17  ;;  %v201_v41 = vsel %vm200_vm11, %v404_v11, %v197_v33 }
  0xc9   :  { %379 = vmatmul.msk.f32.vlgmr.msra.gmra.mxu1 %vm80_vm0, %v294_v31  ;;  %v206_v44 = vsel %vm203_vm12, %v205_v39, %v201_v41  ;;  %v276_v51 = vmul.f32 %v406_v34, %v275_v46 }
  0xca   :  { %v377_v20 = vclamps-f32 %v247_v29, 1.0  ;;  %v207_v45 = vmul.f32 %v206_v44, %v182_v38 }
  0xcb   :  { %v277_v52 = vadd.f32 %v406_v34, %v276_v51 }
  0xcc   :  { %v292_v43 = vadd.f32 1.0, %v377_v20  ;;  %v376_v15 = vclamps-f32 %v207_v45, 1.0 }
  0xcd   :  { %v281_v55 = vsel %vm280_vm15, %v406_v34, %v277_v52 }
  0xce   :  { %v296_v47 = vmul.f32 %v292_v43, %v124_v36  ;;  %v291_v50 = vadd.f32 1.0, %v376_v15  ;;  %v286_v57 = vsel %vm283_vm1, %v285_v53, %v281_v55 }
  0xcf   :  { %v287_v58 = vmul.f32 %v286_v57, %v262_v54 }
  0xd0   :  { %381 = vmatmul.msk.f32.vlgmr.msra.gmra.mxu3 %vm80_vm0, %v296_v47  ;;  %v295_v56 = vmul.f32 %v291_v50, %v123_v24 }
  0xd1   :  { %v378_v59 = vclamps-f32 %v287_v58, 1.0 }
  0xd2   :  { %380 = vmatmul.msk.f32.gmra.mxu1 %vm80_vm0, %v295_v56 }
  0xd3   :  { %v293_v61 = vadd.f32 1.0, %v378_v59 }
  0xd5   :  { %v297_v62 = vmul.f32 %v293_v61, %v125_v60 }
  0xd8   :  { %382 = vmatmul.msk.f32.gmra.mxu3 %vm80_vm0, %v297_v62 }
 0x146   :  { %v335_v63 = vpop.f32.mrf.mxu1 }
 0x147   :  { %v336_v37 = vadd.f32 %v398_v19, %v335_v63 }
 0x149   :  { %347 = vst [vmem:[#allocation8] sm:$0xff] %v336_v37 }
 0x14f   :  { %v338_v0 = vpop.f32.mrf.mxu1 }
 0x150   :  { %v339_v2 = vadd.f32 %v398_v19, %v338_v0 }
 0x152   :  { %348 = vst [vmem:[#allocation8 + $0x8] sm:$0xff] %v339_v2 }
 0x153   :  { %v341_v1 = vpop.f32.mrf.mxu3 }
 0x154   :  { %v342_v27 = vadd.f32 %v398_v19, %v341_v1 }
 0x156   :  { %349 = vst [vmem:[#allocation8 + $0x10] sm:$0xff] %v342_v27 }
 0x15b   :  { %v344_v32 = vpop.f32.mrf.mxu3 }
 0x15c   :  { %v345_v3 = vadd.f32 %v398_v19, %v344_v32 }
 0x15e   :  { %350 = vst [vmem:[#allocation8 + $0x18] sm:$0xff] %v345_v3 }
 0x15f   :  { %363 = dma.vmem_to_hbm [thread:$0]  %s356_s11, 512, %s358_s14, [#allocation4], %s510_s26, %s510_s26, %s511_s27  }
 0x160   :  { %507 = dma.done.wait [#allocation4], 512  }
 0x161   :  { %508 = vsyncadd [#allocation4], 4294966784 }
 0x162   :  { %368 = vsyncpa [#allocation3], 1 }
 0x163   :  { %369 = vsyncpa [#allocation6], 1 }
 0x164   :  { %370 = vsyncpa [#allocation4], 1 }

</bundles_post_ra>
